<compile_context>
chip_gen: v5e
topology: v5e:2x2
jax: 0.10.0
libtpu: 0.0.40
codegen_flags: <defaults>
</compile_context>

<pallas_src>
import numpy as np
import jax
import jax.numpy as jnp
from jax.experimental import pallas as pl
from jax.experimental.pallas import tpu as pltpu

_LANE = 128


def _round_up(x, m):
    return ((x + m - 1) // m) * m


def _time_encode_kernel(t_ref, w_ref, o_ref):
    # t_ref: (TR, fold)      f32 -- `fold` consecutive time values per row
    # w_ref: (1, fold*dim)   f32 -- rate vector tiled `fold` times
    # o_ref: (TR, fold*dim)      -- lane-dense output tile
    t = t_ref[...]
    w = w_ref[...]
    tr, fold = t.shape
    lane = w.shape[1]
    dim = lane // fold
    # NOTE: keep this a VPU broadcast-multiply + EUP cos; do NOT "optimize"
    # into jnp.dot/pl.dot — the rank-1 contraction wastes the MXU.
    cols = [jnp.broadcast_to(t[:, j:j + 1], (tr, dim)) for j in range(fold)]
    t_wide = cols[0] if fold == 1 else jnp.concatenate(cols, axis=-1)
    o_ref[...] = jnp.cos(t_wide * w).astype(o_ref.dtype)


def time_encode(t, w, *, tile_rows=4096, out_dtype=jnp.float32,
                force_kernel=False, min_kernel_elems=1 << 15):
    """GraphMixer TimeEncode forward: cos(t.reshape(-1,1) * w) -> (N, dim).

    t: arbitrary-shape array of times.  w: (dim,) frequency vector.
    out_dtype: set jnp.bfloat16 to halve store traffic if consumers allow it.
    """
    dim = int(w.shape[0])
    t_flat = jnp.asarray(t, dtype=jnp.float32).reshape(-1)
    n = t_flat.shape[0]

    # Small-problem bypass: pallas_call launch/pipeline overhead would exceed
    # the entire workload; let XLA fuse cos(t*w) instead.
    if not force_kernel and n * dim < min_kernel_elems:
        return jnp.cos(t_flat[:, None] * w[None, :].astype(jnp.float32)
                       ).astype(out_dtype)

    # Fold consecutive time values into lanes so each output row is 128 wide.
    if dim <= _LANE and _LANE % dim == 0:
        fold = _LANE // dim
    else:
        fold = 1  # dim >= 128 (or awkward): output stays (N, dim)
    lane = fold * dim

    rows = -(-n // fold)                              # ceil(n / fold)
    tr = min(int(tile_rows), _round_up(rows, 8))      # rows per tile
    tr = _round_up(tr, 8)                             # sublane alignment
    rows_pad = _round_up(rows, tr)
    total = rows_pad * fold
    if total != n:
        t_flat = jnp.pad(t_flat, (0, total - n))      # padded rows sliced off
    t2 = t_flat.reshape(rows_pad, fold)

    # Per-slot weights: lane j*dim + k holds w[k].
    w_row = jnp.tile(w.astype(jnp.float32).reshape(-1), fold).reshape(1, lane)

    grid = (rows_pad // tr,)
    out = pl.pallas_call(
        _time_encode_kernel,
        out_shape=jax.ShapeDtypeStruct((rows_pad, lane), out_dtype),
        grid_spec=pltpu.PrefetchScalarGridSpec(
            num_scalar_prefetch=0,
            grid=grid,
            in_specs=[
                pl.BlockSpec((tr, fold), lambda i: (i, 0)),   # time values
                pl.BlockSpec((1, lane), lambda i: (0, 0)),    # rates (bcast)
            ],
            out_specs=pl.BlockSpec((tr, lane), lambda i: (i, 0)),
        ),
        compiler_params=pltpu.CompilerParams(
            dimension_semantics=("parallel",),
        ),
    )(t2, w_row)

    # (rows_pad, fold*dim) row-major is exactly (rows_pad*fold, dim) row-major.
    return out.reshape(rows_pad * fold, dim)[:n]


def make_time_encode_params(dim):
    # Exactly TimeEncode.reset_parameters: w = 1 / 10**linspace(0, 9, dim).
    w = 1.0 / 10.0 ** np.linspace(0, 9, dim, dtype=np.float32)
    return jnp.asarray(w, dtype=jnp.float32)


if __name__ == "__main__":
    dim = 32
    batch, seq = 8, 8            # 64 time values

    key = jax.random.PRNGKey(0)
    k0, k1 = jax.random.split(key)
    t = jax.random.uniform(k0, (batch, seq), dtype=jnp.float32) * 1000.0
    w = make_time_encode_params(dim)

    out = time_encode(t, w, tile_rows=4096, force_kernel=True)
    out = jax.block_until_ready(out)

    ref = jnp.cos(t.reshape(-1, 1) * w[None, :])
    np.testing.assert_allclose(np.asarray(out), np.asarray(ref),
                               rtol=1e-6, atol=1e-6)
    assert out.shape == (batch * seq, dim)
    assert out.dtype == jnp.float32

    # Ragged N (63 values): exercises the pad + slice tail handling.
    t2 = jax.random.uniform(k1, (7, 9), dtype=jnp.float32) * 1000.0
    out2 = jax.block_until_ready(time_encode(t2, w, force_kernel=True))
    ref2 = jnp.cos(t2.reshape(-1, 1) * w[None, :])
    np.testing.assert_allclose(np.asarray(out2), np.asarray(ref2),
                               rtol=1e-6, atol=1e-6)
    assert out2.shape == (63, dim)

    print("KERNEL_OK")
</pallas_src>

<mosaic_0001>
module attributes {stable_mosaic.version = 11 : i64} {
  func.func @_time_encode_kernel(%arg0: i32, %arg1: memref<16x4xf32, #tpu.memory_space<vmem>>, %arg2: memref<1x128xf32, #tpu.memory_space<vmem>>, %arg3: memref<16x128xf32, #tpu.memory_space<vmem>>) attributes {dimension_semantics = [#tpu.dimension_semantics<parallel>], iteration_bounds = array<i64: 1>, scalar_prefetch = 0 : i64, scratch_operands = 0 : i64, tpu.core_type = #tpu.core_type<tc>, window_params = [{transform_indices = @transform_0, window_bounds = array<i64: 16, 4>}, {pipeline_mode = #tpu.pipeline_mode<synchronous>, transform_indices = @transform_1, window_bounds = array<i64: 1, 128>}, {transform_indices = @transform_2, window_bounds = array<i64: 16, 128>}]} {
    %c0 = arith.constant 0 : index
    %c0_0 = arith.constant 0 : index
    %0 = vector.load %arg1[%c0, %c0_0] : memref<16x4xf32, #tpu.memory_space<vmem>>, vector<16x4xf32>
    %c0_1 = arith.constant 0 : index
    %c0_2 = arith.constant 0 : index
    %1 = vector.load %arg2[%c0_1, %c0_2] : memref<1x128xf32, #tpu.memory_space<vmem>>, vector<1x128xf32>
    %2 = vector.extract_strided_slice %0 {offsets = [0, 0], sizes = [16, 1], strides = [1, 1]} : vector<16x4xf32> to vector<16x1xf32>
    %3 = vector.shape_cast %2 : vector<16x1xf32> to vector<16x1xf32>
    %4 = vector.broadcast %3 : vector<16x1xf32> to vector<16x32xf32>
    %5 = vector.extract_strided_slice %0 {offsets = [0, 1], sizes = [16, 1], strides = [1, 1]} : vector<16x4xf32> to vector<16x1xf32>
    %6 = vector.shape_cast %5 : vector<16x1xf32> to vector<16x1xf32>
    %7 = vector.broadcast %6 : vector<16x1xf32> to vector<16x32xf32>
    %8 = vector.extract_strided_slice %0 {offsets = [0, 2], sizes = [16, 1], strides = [1, 1]} : vector<16x4xf32> to vector<16x1xf32>
    %9 = vector.shape_cast %8 : vector<16x1xf32> to vector<16x1xf32>
    %10 = vector.broadcast %9 : vector<16x1xf32> to vector<16x32xf32>
    %11 = vector.extract_strided_slice %0 {offsets = [0, 3], sizes = [16, 1], strides = [1, 1]} : vector<16x4xf32> to vector<16x1xf32>
    %12 = vector.shape_cast %11 : vector<16x1xf32> to vector<16x1xf32>
    %13 = vector.broadcast %12 : vector<16x1xf32> to vector<16x32xf32>
    %14 = tpu.concatenate %4, %7, %10, %13 in 1 : vector<16x32xf32>, vector<16x32xf32>, vector<16x32xf32>, vector<16x32xf32> -> vector<16x128xf32>
    %15 = vector.broadcast %1 : vector<1x128xf32> to vector<16x128xf32>
    %16 = arith.mulf %14, %15 : vector<16x128xf32>
    %17 = math.cos %16 : vector<16x128xf32>
    %c0_3 = arith.constant 0 : index
    %c0_4 = arith.constant 0 : index
    %18 = vector.load %arg3[%c0_3, %c0_4] : memref<16x128xf32, #tpu.memory_space<vmem>>, vector<16x128xf32>
    tpu.vector_store %arg3[%c0_3, %c0_4], %17 {strides = array<i32>} : memref<16x128xf32, #tpu.memory_space<vmem>>, vector<16x128xf32>,
    return
  }
  func.func @transform_0(%arg0: i32) -> (i32, i32) {
    %c0_i32 = arith.constant 0 : i32
    %c0_i32_0 = arith.constant 0 : i32
    return %arg0, %c0_i32 : i32, i32
  }
  func.func @transform_1(%arg0: i32) -> (i32, i32) {
    %c0_i32 = arith.constant 0 : i32
    %c0_i32_0 = arith.constant 0 : i32
    %c0_i32_1 = arith.constant 0 : i32
    return %c0_i32, %c0_i32_0 : i32, i32
  }
  func.func @transform_2(%arg0: i32) -> (i32, i32) {
    %c0_i32 = arith.constant 0 : i32
    %c0_i32_0 = arith.constant 0 : i32
    return %arg0, %c0_i32 : i32, i32
  }
}

</mosaic_0001>

<bundles_post_ra>
// kernel: tpu_custom_call.1
= control target key start
LH: loop header
LB: loop body
LE: loop exit
PB: predicated region body
PF: predicated region fallthrough
CT: control target
= control target key end

     0   :  { %v442_v1 = vmov 1   ;;  %v443_v2 = vmov 0   ;;  %s669_s0 = inlined_call_operand.vmem [shape: f32[16,4], index: 0, kind: input, shape index: {}]   ;;  %s670_s1 = inlined_call_operand.vmem [shape: f32[1,128], index: 1, kind: input, shape index: {}]   ;;  %s671_s2 = inlined_call_operand.hbm [shape: f32[16,128], index: 2, kind: output, shape index: {}]  }
   0x1   :  { %v12_v0 = vld [vmem:[%s669_s0] sm:$0xff]  ;;  %411 = vset.pattern.permute.xlu1 %v442_v1  ;;  %410 = vset.pattern.permute.xlu0 %v443_v2 }
   0x2   :  { %7 = vsyncpa [#allocation3], 0  ;;  %26 = vperm.xlu1 %411, %v12_v0   ;;  %17 = vperm.xlu0 %410, %v12_v0   ;;  %v444_v3 = vmov 2   ;;  %v13_v4 = vld [vmem:[%s669_s0 + $0x8] sm:$0xff]  ;;  %v445_v5 = vmov 3   ;;  %vm49_vm0 = vcmask 261120  }
   0x3   :  { %412 = vset.pattern.permute.xlu2 %v444_v3  ;;  %vm52_vm1 = vcmask 523264   ;;  %vm55_vm2 = vcmask 785408   ;;  %v415_v14 = vld [vmem:[%s670_s1] ss:$0 sm:$0xff]  ;;  %v446_v46 = vmov 683565275  }
   0x4   :  { %34 = vperm.xlu2 %412, %v12_v0   ;;  %v447_v48 = vmov 2475754826   ;;  %v448_v52 = vmov 2131351028   ;;  %v449_v55 = vmov 2102212464  }
   0x5   :  { %v450_v58 = vmov 920167782   ;;  %v451_v61 = vmov 1326507024   ;;  %s452_s1 = smov [#allocation2]   ;;  %s379_s17 = sshll.u32 %s671_s2, 4  ;;  %s380_s17 = int_to_ptr.hbm [resolvable:$true] %s379_s17 }
   0x6   :  { %s377_s14 = sshll.u32 %s452_s1, 4  ;;  %s453_s18 = smov 128   ;;  %s378_s14 = int_to_ptr.vmem [resolvable:$true] %s377_s14 }
   0x7   :  { %s454_s19 = smov 8  }
   0xa   :  { %30 = vperm.xlu1 %411, %v13_v4   ;;  %22 = vperm.xlu0 %410, %v13_v4  }
   0xc   :  { %38 = vperm.xlu2 %412, %v13_v4  }
  0x12   :  { %414 = vset.pattern.permute.xlu1 %v445_v5  ;;  %413 = vset.pattern.permute.xlu0 %v445_v5 }
  0x13   :  { %46 = vperm.xlu1 %414, %v13_v4   ;;  %42 = vperm.xlu0 %413, %v12_v0  }
  0x5e   :  { %v35_v8 = vpop.permute.xlu2 %34 }
  0x66   :  { %v39_v12 = vpop.permute.xlu2 %38 }
  0x74   :  { %v27_v6 = vpop.permute.xlu1 %26  ;;  %v18_v7 = vpop.permute.xlu0 %17 }
  0x75   :  { %v50_v11 = vsel %vm49_vm0, %v18_v7, %v27_v6 }
  0x76   :  { %v53_v17 = vsel %vm52_vm1, %v50_v11, %v35_v8 }
  0x7c   :  { %v31_v9 = vpop.permute.xlu1 %30  ;;  %v23_v10 = vpop.permute.xlu0 %22 }
  0x7d   :  { %v51_v13 = vsel %vm49_vm0, %v23_v10, %v31_v9 }
  0x7e   :  { %v54_v16 = vsel %vm52_vm1, %v51_v13, %v39_v12 }
  0x85   :  { %v47_v15 = vpop.permute.xlu1 %46  ;;  %v43_v18 = vpop.permute.xlu0 %42 }
  0x86   :  { %v57_v19 = vsel %vm55_vm2, %v54_v16, %v47_v15  ;;  %v56_v20 = vsel %vm55_vm2, %v53_v17, %v43_v18 }
  0x87   :  { %v480_v21 = vmul.f32 %v415_v14, %v57_v19  ;;  %v482_v22 = vmul.f32 %v415_v14, %v56_v20 }
  0x89   :  { %v217_v23 = vand.u32 2147483647, %v480_v21  ;;  %v220_v24 = vand.u32 2139095040, %v480_v21  ;;  %v63_v25 = vand.u32 2147483647, %v482_v22  ;;  %v66_v26 = vand.u32 2139095040, %v482_v22 }
  0x8b   :  { %v221_v27 = vshrl.u32 %v220_v24, 23  ;;  %v224_v28 = vand.u32 8388607, %v217_v23  ;;  %v67_v29 = vshrl.u32 %v66_v26, 23  ;;  %v70_v32 = vand.u32 8388607, %v63_v25 }
  0x8d   :  { %v394_v30 = vadd.s32 4294967169, %v221_v27  ;;  %v225_v31 = vor.u32 8388608, %v224_v28  ;;  %v391_v33 = vadd.s32 4294967169, %v67_v29  ;;  %v71_v37 = vor.u32 8388608, %v70_v32 }
  0x8f   :  { %v227_v34 = vadd.s32 1, %v394_v30  ;;  %v73_v35 = vadd.s32 1, %v391_v33  ;;  %v492_v36 = vshll.u32 %v225_v31, 8  ;;  %v499_v44 = vshll.u32 %v71_v37, 8 }
  0x91   :  { %vm228_vm3 = vcmp.gt.s32.totalorder %v227_v34, 0  ;;  %vm74_vm4 = vcmp.gt.s32.totalorder %v73_v35, 0  ;;  %v495_v42 = vand.u32 65535, %v492_v36  ;;  %v267_v50 = vshrl.u32 %v492_v36, 16 }
  0x92   :  { %v229_v38 = vsel %vm228_vm3, %v227_v34, 0  ;;  %v75_v40 = vsel %vm74_vm4, %v73_v35, 0 }
  0x93   :  { %v231_v39 = vand.u32 31, %v229_v38  ;;  %v497_v43 = vand.u32 31, %v75_v40  ;;  %v501_v45 = vshrl.u32 %v229_v38, 5  ;;  %v539_v30 = vshrl.u32 %v75_v40, 5 }
  0x95   :  { %v232_v41 = vsub.s32 32, %v231_v39  ;;  %v234_v47 = vshll.u32 %v446_v46, %v231_v39  ;;  %v237_v49 = vshll.u32 %v447_v48, %v231_v39  ;;  %v240_v54 = vshll.u32 %v448_v52, %v231_v39 }
  0x96   :  { %v243_v57 = vshll.u32 %v449_v55, %v231_v39  ;;  %v246_v60 = vshll.u32 %v450_v58, %v231_v39  ;;  %v511_v3 = vsub.s32 32, %v497_v43  ;;  %vm249_vm5 = vcmp.lt.s32.totalorder %v501_v45, 1 }
  0x97   :  { %v235_v51 = vshrl.u32 %v447_v48, %v232_v41  ;;  %v238_v53 = vshrl.u32 %v448_v52, %v232_v41  ;;  %v241_v56 = vshrl.u32 %v449_v55, %v232_v41  ;;  %v244_v59 = vshrl.u32 %v450_v58, %v232_v41 }
  0x98   :  { %v247_v62 = vshrl.u32 %v451_v61, %v232_v41  ;;  %vm250_vm6 = vcmp.lt.s32.totalorder %v501_v45, 2  ;;  %v233_v6 = vshrl.u32 %v446_v46, %v232_v41  ;;  %vm252_vm7 = vcmp.lt.s32.totalorder %v501_v45, 4 }
  0x99   :  { %v236_v63 = vor.u32 %v235_v51, %v234_v47  ;;  %v239_v0 = vor.u32 %v238_v53, %v237_v49  ;;  %v242_v1 = vor.u32 %v241_v56, %v240_v54  ;;  %v245_v4 = vor.u32 %v244_v59, %v243_v57 }
  0x9a   :  { %v248_v5 = vor.u32 %v247_v62, %v246_v60  ;;  %vm251_vm8 = vcmp.lt.s32.totalorder %v501_v45, 3  ;;  %v80_v11 = vshll.u32 %v446_v46, %v497_v43  ;;  %v81_v15 = vshrl.u32 %v447_v48, %v511_v3 }
  0x9b   :  { %v257_v7 = vsel %vm249_vm5, %v236_v63, %v239_v0  ;;  %v261_v8 = vsel %vm249_vm5, %v239_v0, %v242_v1  ;;  %v258_v9 = vsel %vm252_vm7, %v245_v4, 920167782  ;;  %v254_v12 = vsel %vm252_vm7, %v242_v1, 2102212464 }
  0x9c   :  { %v262_v10 = vsel %vm252_vm7, %v248_v5, 1326507024  ;;  %v259_v13 = vsel %vm251_vm8, %v242_v1, %v258_v9  ;;  %v83_v18 = vshll.u32 %v447_v48, %v497_v43  ;;  %v84_v19 = vshrl.u32 %v448_v52, %v511_v3 }
  0x9d   :  { %v263_v14 = vsel %vm251_vm8, %v245_v4, %v262_v10  ;;  %v260_v16 = vsel %vm250_vm6, %v257_v7, %v259_v13  ;;  %v253_v28 = vsel %vm249_vm5, %v233_v6, %v236_v63  ;;  %v255_v29 = vsel %vm251_vm8, %v239_v0, %v254_v12 }
  0x9e   :  { %v264_v17 = vsel %vm250_vm6, %v261_v8, %v263_v14  ;;  %v290_v26 = vand.u32 65535, %v260_v16  ;;  %v291_v27 = vshrl.u32 %v260_v16, 16  ;;  %v541_v31 = vor.u32 %v81_v15, %v80_v11 }
  0x9f   :  { %v268_v20 = vand.u32 65535, %v264_v17  ;;  %v269_v24 = vshrl.u32 %v264_v17, 16  ;;  %v544_v34 = vor.u32 %v84_v19, %v83_v18  ;;  %v87_v35 = vshrl.u32 %v449_v55, %v511_v3 }
  0xa0   :  { %v293_v38 = vmul.u32 %v291_v27, %v495_v42  ;;  %v294_v39 = vmul.u32 %v290_v26, %v267_v50  ;;  %v86_v41 = vshll.u32 %v448_v52, %v497_v43  ;;  %v292_v48 = vmul.u32 %v290_v26, %v495_v42 }
  0xa1   :  { %v271_v32 = vmul.u32 %v269_v24, %v495_v42  ;;  %v272_v33 = vmul.u32 %v268_v20, %v267_v50  ;;  %v270_v37 = vmul.u32 %v268_v20, %v495_v42  ;;  %v273_v47 = vmul.u32 %v269_v24, %v267_v50 }
  0xa2   :  { %v295_v49 = vmul.u32 %v291_v27, %v267_v50  ;;  %v296_v56 = vshll.u32 %v293_v38, 16  ;;  %v298_v59 = vshll.u32 %v294_v39, 16  ;;  %v552_v60 = vor.u32 %v87_v35, %v86_v41 }
  0xa3   :  { %v274_v40 = vshll.u32 %v271_v32, 16  ;;  %v275_v51 = vshrl.u32 %v271_v32, 16  ;;  %v276_v53 = vshll.u32 %v272_v33, 16  ;;  %v277_v54 = vshrl.u32 %v272_v33, 16 }
  0xa4   :  { %vm300_vm10 = vc.u32 %v292_v48, %v296_v56  ;;  %v302_v63 = vadd.s32 %v296_v56, %v292_v48  ;;  %v90_v52 = vshrl.u32 %v450_v58, %v511_v3  ;;  %v89_v50 = vshll.u32 %v449_v55, %v497_v43 }
  0xa5   :  { %vm278_vm9 = vc.u32 %v270_v37, %v274_v40  ;;  %v280_v57 = vadd.s32 %v274_v40, %v270_v37  ;;  %v301_v42 = vsel %vm300_vm10, 1, %v443_v2  ;;  %v92_v5 = vshll.u32 %v450_v58, %v497_v43 }
  0xa6   :  { %v279_v62 = vsel %vm278_vm9, 1, %v443_v2  ;;  %v303_v4 = vadd.s32 %v301_v42, %v295_v49  ;;  %vm304_vm12 = vc.u32 %v302_v63, %v298_v59  ;;  %v91_v8 = vor.u32 %v90_v52, %v89_v50 }
  0xa7   :  { %v281_v0 = vadd.s32 %v279_v62, %v273_v47  ;;  %vm282_vm11 = vc.u32 %v280_v57, %v276_v53  ;;  %v305_v7 = vsel %vm304_vm12, 1, %v443_v2  ;;  %v93_v9 = vshrl.u32 %v451_v61, %v511_v3 }
  0xa8   :  { %v283_v1 = vsel %vm282_vm11, 1, %v443_v2  ;;  %v297_v10 = vshrl.u32 %v293_v38, 16  ;;  %v299_v11 = vshrl.u32 %v294_v39, 16  ;;  %v566_v12 = vadd.s32 %v302_v63, %v298_v59 }
  0xa9   :  { %v285_v6 = vadd.s32 %v283_v1, %v281_v0  ;;  %v307_v13 = vadd.s32 %v305_v7, %v303_v4  ;;  %v94_v14 = vor.u32 %v93_v9, %v92_v5  ;;  %vm95_vm13 = vcmp.lt.s32.totalorder %v539_v30, 1 }
  0xaa   :  { %vm98_vm14 = vcmp.lt.s32.totalorder %v539_v30, 4  ;;  %vm97_vm15 = vcmp.lt.s32.totalorder %v539_v30, 3  ;;  %v103_v43 = vsel %vm95_vm13, %v541_v31, %v544_v34  ;;  %vm96_vm0 = vcmp.lt.s32.totalorder %v539_v30, 2 }
  0xab   :  { %v286_v55 = vadd.s32 %v285_v6, %v275_v51  ;;  %v308_v15 = vadd.s32 %v307_v13, %v297_v10  ;;  %v104_v58 = vsel %vm98_vm14, %v91_v8, 920167782  ;;  %v107_v17 = vsel %vm95_vm13, %v544_v34, %v552_v60 }
  0xac   :  { %v105_v16 = vsel %vm97_vm15, %v552_v60, %v104_v58  ;;  %v256_v18 = vsel %vm250_vm6, %v253_v28, %v255_v29  ;;  %v108_v24 = vsel %vm98_vm14, %v94_v14, 1326507024  ;;  %v112_v27 = vand.u32 65535, %v499_v44 }
  0xad   :  { %v577_v61 = vadd.s32 %v286_v55, %v277_v54  ;;  %v309_v19 = vadd.s32 %v308_v15, %v299_v11  ;;  %v106_v20 = vsel %vm96_vm0, %v103_v43, %v105_v16  ;;  %v109_v26 = vsel %vm97_vm15, %v91_v8, %v108_v24 }
  0xae   :  { %v136_v32 = vand.u32 65535, %v106_v20  ;;  %v110_v45 = vsel %vm96_vm0, %v107_v17, %v109_v26  ;;  %v113_v28 = vshrl.u32 %v499_v44, 16  ;;  %v137_v29 = vshrl.u32 %v106_v20, 16 }
  0xaf   :  { %vm312_vm1 = vc.u32 %v577_v61, %v566_v12  ;;  %v313_v33 = vadd.s32 1, %v309_v19  ;;  %v310_v35 = vmul.u32 %v492_v36, %v256_v18  ;;  %v114_v37 = vand.u32 65535, %v110_v45 }
  0xb0   :  { %v115_v38 = vshrl.u32 %v110_v45, 16  ;;  %v139_v41 = vmul.u32 %v137_v29, %v112_v27  ;;  %v140_v47 = vmul.u32 %v136_v32, %v113_v28  ;;  %v138_v51 = vmul.u32 %v136_v32, %v112_v27 }
  0xb1   :  { %v314_v39 = vsel %vm312_vm1, %v313_v33, %v309_v19  ;;  %v118_v49 = vmul.u32 %v114_v37, %v113_v28  ;;  %v141_v53 = vmul.u32 %v137_v29, %v113_v28  ;;  %v116_v57 = vmul.u32 %v114_v37, %v112_v27 }
  0xb2   :  { %v315_v40 = vadd.s32 %v314_v39, %v310_v35  ;;  %v117_v48 = vmul.u32 %v115_v38, %v112_v27  ;;  %v142_v54 = vshll.u32 %v139_v41, 16  ;;  %v119_v59 = vmul.u32 %v115_v38, %v113_v28 }
  0xb3   :  { %v122_v63 = vshll.u32 %v118_v49, 16  ;;  %v144_v52 = vshll.u32 %v140_v47, 16  ;;  %v100_v6 = vsel %vm98_vm14, %v552_v60, 2102212464  ;;  %v79_v8 = vshrl.u32 %v446_v46, %v511_v3 }
  0xb4   :  { %v316_v56 = vadd.s32 536870912, %v315_v40  ;;  %v120_v62 = vshll.u32 %v117_v48, 16  ;;  %vm146_vm2 = vc.u32 %v138_v51, %v142_v54  ;;  %v148_v0 = vadd.s32 %v142_v54, %v138_v51 }
  0xb5   :  { %v147_v50 = vsel %vm146_vm2, 1, %v443_v2  ;;  %v121_v13 = vshrl.u32 %v117_v48, 16  ;;  %v99_v15 = vsel %vm95_vm13, %v79_v8, %v541_v31  ;;  %v101_v60 = vsel %vm97_vm15, %v544_v34, %v100_v6 }
  0xb6   :  { %v602_v36 = vshrl.u32 %v316_v56, 30  ;;  %vm124_vm3 = vc.u32 %v116_v57, %v120_v62  ;;  %v126_v42 = vadd.s32 %v120_v62, %v116_v57  ;;  %v149_v4 = vadd.s32 %v147_v50, %v141_v53 }
  0xb7   :  { %v125_v1 = vsel %vm124_vm3, 1, %v443_v2  ;;  %vm150_vm4 = vc.u32 %v148_v0, %v144_v52  ;;  %v143_v43 = vshrl.u32 %v139_v41, 16  ;;  %v123_v46 = vshrl.u32 %v118_v49, 16 }
  0xb8   :  { %v318_v5 = vshll.u32 %v602_v36, 30  ;;  %v127_v7 = vadd.s32 %v125_v1, %v119_v59  ;;  %vm128_vm5 = vc.u32 %v126_v42, %v122_v63  ;;  %v151_v10 = vsel %vm150_vm4, 1, %v443_v2 }
  0xb9   :  { %v129_v9 = vsel %vm128_vm5, 1, %v443_v2  ;;  %v153_v14 = vadd.s32 %v151_v10, %v149_v4  ;;  %v145_v16 = vshrl.u32 %v140_v47, 16  ;;  %v152_v19 = vadd.s32 %v148_v0, %v144_v52 }
  0xba   :  { %v319_v11 = vsub.s32 %v315_v40, %v318_v5  ;;  %v131_v55 = vadd.s32 %v129_v9, %v127_v7  ;;  %v102_v24 = vsel %vm96_vm0, %v99_v15, %v101_v60  ;;  %v311_v28 = vadd.s32 %v566_v12, %v577_v61 }
  0xbb   :  { %v154_v17 = vadd.s32 %v153_v14, %v143_v43  ;;  %v156_v34 = vmul.u32 %v499_v44, %v102_v24  ;;  %vm219_vm10 = vcmp.lt.s32.totalorder %v480_v21, 0  ;;  %vm631_vm11 = vcmp.le.f32.partialorder %v217_v23, 0.7853982 }
  0xbc   :  { %vm320_vm6 = vcmp.lt.s32.totalorder %v319_v11, 0  ;;  %v321_v58 = vsub.s32 0, %v319_v11  ;;  %v132_v3 = vadd.s32 %v131_v55, %v121_v13  ;;  %v341_v23 = vsub.s32 4, %v602_v36 }
  0xbd   :  { %v155_v26 = vadd.s32 %v154_v17, %v145_v16  ;;  %vm65_vm13 = vcmp.lt.s32.totalorder %v482_v22, 0  ;;  %vm649_vm14 = vcmp.le.f32.partialorder %v63_v25, 0.7853982  ;;  %vm360_vm2 = vweird.f32 %v480_v21 }
  0xbe   :  { %v322_v2 = vsel %vm320_vm6, %v321_v58, %v319_v11  ;;  %v133_v18 = vadd.s32 %v132_v3, %v123_v46  ;;  %v342_v15 = vsel %vm219_vm10, %v341_v23, %v602_v36  ;;  %vm206_vm6 = vweird.f32 %v482_v22 }
  0xbf   :  { %v323_v20 = vclz %v322_v2  ;;  %v159_v27 = vadd.s32 1, %v155_v26  ;;  %v344_v3 = vsel %vm631_vm11, 0, %v342_v15 }
  0xc0   :  { %vm158_vm7 = vc.u32 %v133_v18, %v152_v19  ;;  %v157_v1 = vadd.s32 %v152_v19, %v133_v18  ;;  %v361_v24 = vand.u32 3, %v344_v3 }
  0xc1   :  { %v395_v31 = vadd.s32 4294967294, %v323_v20  ;;  %v160_v32 = vsel %vm158_vm7, %v159_v27, %v155_v26 }
  0xc2   :  { %v161_v45 = vadd.s32 %v160_v32, %v156_v34  ;;  %vm363_vm15 = vcmp.eq.s32.totalorder %v361_v24, 0  ;;  %vm366_vm0 = vcmp.eq.s32.totalorder %v361_v24, 2  ;;  %vm362_vm1 = vcmp.lt.s32.totalorder %v361_v24, 2 }
  0xc3   :  { %vm396_vm8 = vcmp.lt.s32.totalorder %v395_v31, 0 }
  0xc4   :  { %v326_v33 = vsel %vm396_vm8, 0, %v395_v31  ;;  %v162_v37 = vadd.s32 536870912, %v161_v45 }
  0xc5   :  { %v327_v29 = vsub.s32 32, %v326_v33  ;;  %v331_v35 = vsub.s32 4294967266, %v326_v33  ;;  %v328_v38 = vshll.u32 %v319_v11, %v326_v33 }
  0xc6   :  { %v625_v41 = vshrl.u32 %v162_v37, 30 }
  0xc7   :  { %v329_v39 = vshrl.u32 %v311_v28, %v327_v29  ;;  %v332_v30 = vadd.s32 127, %v331_v35 }
  0xc8   :  { %v164_v48 = vshll.u32 %v625_v41, 30 }
  0xc9   :  { %v330_v47 = vor.u32 %v329_v39, %v328_v38  ;;  %v333_v40 = vshll.u32 %v332_v30, 23  ;;  %v187_v30 = vsub.s32 4, %v625_v41 }
  0xca   :  { %v165_v49 = vsub.s32 %v161_v45, %v164_v48 }
  0xcb   :  { %v334_v44 = vor.u32 4788187, %v333_v40  ;;  %v337_v53 = vcvt.s32.f32 %v330_v47 }
  0xcc   :  { %vm166_vm9 = vcmp.lt.s32.totalorder %v165_v49, 0  ;;  %v167_v54 = vsub.s32 0, %v165_v49 }
  0xcd   :  { %v335_v51 = vand.u32 2147483647, %v334_v44 }
  0xce   :  { %v168_v12 = vsel %vm166_vm9, %v167_v54, %v165_v49 }
  0xcf   :  { %v338_v56 = vmul.f32 %v337_v53, %v335_v51  ;;  %v169_v57 = vclz %v168_v12 }
  0xd1   :  { %v339_v61 = vxor.u32 2147483648, %v338_v56  ;;  %v392_v63 = vadd.s32 4294967294, %v169_v57 }
  0xd3   :  { %v340_v62 = vsel %vm219_vm10, %v339_v61, %v338_v56  ;;  %vm393_vm12 = vcmp.lt.s32.totalorder %v392_v63, 0 }
  0xd4   :  { %v343_v52 = vsel %vm631_vm11, %v480_v21, %v340_v62  ;;  %v172_v42 = vsel %vm393_vm12, 0, %v392_v63 }
  0xd5   :  { %v345_v0 = vmul.f32 %v343_v52, %v343_v52  ;;  %v173_v4 = vsub.s32 32, %v172_v42  ;;  %v177_v5 = vsub.s32 4294967266, %v172_v42  ;;  %v174_v8 = vshll.u32 %v165_v49, %v172_v42 }
  0xd6   :  { %v188_v49 = vsel %vm65_vm13, %v187_v30, %v625_v41 }
  0xd7   :  { %v353_v50 = vmul.f32 -0.00019511016, %v345_v0  ;;  %v346_v6 = vmul.f32 -0.001358992, %v345_v0  ;;  %v175_v9 = vshrl.u32 %v157_v1, %v173_v4  ;;  %v178_v10 = vadd.s32 127, %v177_v5 }
  0xd8   :  { %v190_v21 = vsel %vm649_vm14, 0, %v188_v49 }
  0xd9   :  { %v354_v7 = vadd.f32 0.008332121, %v353_v50  ;;  %v347_v11 = vadd.f32 0.041655596, %v346_v6  ;;  %v176_v55 = vor.u32 %v175_v9, %v174_v8  ;;  %v179_v14 = vshll.u32 %v178_v10, 23 }
  0xda   :  { %v207_v57 = vand.u32 3, %v190_v21 }
  0xdb   :  { %v355_v13 = vmul.f32 %v354_v7, %v345_v0  ;;  %v348_v60 = vmul.f32 %v347_v11, %v345_v0  ;;  %v180_v58 = vor.u32 4788187, %v179_v14  ;;  %v183_v2 = vcvt.s32.f32 %v176_v55 }
  0xdc   :  { %vm209_vm3 = vcmp.eq.s32.totalorder %v207_v57, 0  ;;  %vm212_vm4 = vcmp.eq.s32.totalorder %v207_v57, 2  ;;  %vm208_vm5 = vcmp.lt.s32.totalorder %v207_v57, 2 }
  0xdd   :  { %v356_v43 = vadd.f32 -0.16666654, %v355_v13  ;;  %v349_v46 = vadd.f32 -0.4999988, %v348_v60  ;;  %v181_v17 = vand.u32 2147483647, %v180_v58 }
  0xdf   :  { %v357_v16 = vmul.f32 %v356_v43, %v345_v0  ;;  %v350_v18 = vmul.f32 %v349_v46, %v345_v0  ;;  %v184_v20 = vmul.f32 %v183_v2, %v181_v17 }
  0xe1   :  { %v358_v19 = vadd.f32 1.0, %v357_v16  ;;  %v351_v26 = vadd.f32 1.0, %v350_v18  ;;  %v185_v27 = vxor.u32 2147483648, %v184_v20 }
  0xe3   :  { %v359_v31 = vmul.f32 %v358_v19, %v343_v52  ;;  %v367_v36 = vxor.u32 2147483648, %v351_v26  ;;  %v186_v33 = vsel %vm65_vm13, %v185_v27, %v184_v20 }
  0xe4   :  { %v189_v45 = vsel %vm649_vm14, %v482_v22, %v186_v33 }
  0xe5   :  { %v364_v34 = vxor.u32 2147483648, %v359_v31  ;;  %v191_v28 = vmul.f32 %v189_v45, %v189_v45  ;;  %v368_v35 = vsel %vm366_vm0, %v367_v36, %v359_v31 }
  0xe7   :  { %v365_v29 = vsel %vm363_vm15, %v351_v26, %v364_v34  ;;  %v199_v25 = vmul.f32 -0.00019511016, %v191_v28  ;;  %v192_v38 = vmul.f32 -0.001358992, %v191_v28 }
  0xe8   :  { %v369_v37 = vsel %vm362_vm1, %v365_v29, %v368_v35 }
  0xe9   :  { %v370_v39 = vsel %vm360_vm2, nan, %v369_v37  ;;  %v200_v47 = vadd.f32 0.008332121, %v199_v25  ;;  %v193_v40 = vadd.f32 0.041655596, %v192_v38 }
  0xea   :  { %372 = vst [vmem:[#allocation2 + $0x8] sm:$0xff] %v370_v39 }
  0xeb   :  { %v201_v48 = vmul.f32 %v200_v47, %v191_v28  ;;  %v194_v44 = vmul.f32 %v193_v40, %v191_v28 }
  0xed   :  { %v202_v51 = vadd.f32 -0.16666654, %v201_v48  ;;  %v195_v53 = vadd.f32 -0.4999988, %v194_v44 }
  0xef   :  { %v203_v54 = vmul.f32 %v202_v51, %v191_v28  ;;  %v196_v56 = vmul.f32 %v195_v53, %v191_v28 }
  0xf1   :  { %v204_v12 = vadd.f32 1.0, %v203_v54  ;;  %v197_v61 = vadd.f32 1.0, %v196_v56 }
  0xf3   :  { %v205_v59 = vmul.f32 %v204_v12, %v189_v45  ;;  %v213_v62 = vxor.u32 2147483648, %v197_v61 }
  0xf5   :  { %v210_v63 = vxor.u32 2147483648, %v205_v59  ;;  %v214_v52 = vsel %vm212_vm4, %v213_v62, %v205_v59 }
  0xf7   :  { %v211_v41 = vsel %vm209_vm3, %v197_v61, %v210_v63 }
  0xf8   :  { %v215_v0 = vsel %vm208_vm5, %v211_v41, %v214_v52 }
  0xf9   :  { %v216_v42 = vsel %vm206_vm6, nan, %v215_v0 }
  0xfa   :  { %371 = vst [vmem:[#allocation2] sm:$0xff] %v216_v42 }
  0xfb   :  { %385 = dma.vmem_to_hbm [thread:$0]  %s378_s14, 256, %s380_s17, [#allocation3], %s453_s18, %s453_s18, %s454_s19  }
  0xfc   :  { %440 = dma.done.wait [#allocation3], 256  }
  0xfd   :  { %441 = vsyncadd [#allocation3], 4294967040 }
  0xfe   :  { %390 = vsyncpa [#allocation3], 1 }

</bundles_post_ra>
